<compile_context>
chip_gen: v5e
topology: v5e:2x2
jax: 0.10.0
libtpu: 0.0.40
codegen_flags: <defaults>
</compile_context>

<pallas_src>
import math

import numpy as np

import jax
import jax.numpy as jnp
from jax.experimental import pallas as pl
from jax.experimental.pallas import tpu as pltpu

_LANE = 128


def _round_up(v, m):
    return ((v + m - 1) // m) * m


def _vmem_limit_bytes():
    """Per-generation scoped-VMEM limit: ~3/4 of physical, capped at 96 MiB
    (v5e/v6e: 96 MiB, v7x: 48 MiB); conservative 32 MiB if the query fails."""
    try:
        phys = int(pltpu.get_tpu_info().vmem_capacity_bytes)
        return max(32 << 20, min((phys * 3) // 4, 96 << 20))
    except Exception:
        return 32 << 20


def _pick_tile(n):
    """Largest lane-multiple tile whose extra padding (vs the minimal 128-pad)
    stays <= ~10% of the padded extent."""
    min_pad = _round_up(max(n, 1), _LANE)
    best = _LANE
    cand = 256
    while cand <= 2048:
        padded = _round_up(n, cand)
        if (padded - min_pad) * 10 <= padded:
            best = cand
        cand *= 2
    return best


def _select_tiles(n, fp, itemsize, vmem_budget):
    """Row tile tm / column (reduction) tile tk for phase 2."""
    tk = _pick_tile(n)
    tm = _pick_tile(n)
    # v7x megacore: prefer >= 4 row tiles when the graph is big enough.
    while tm > _LANE and n >= 4 * _LANE and _round_up(n, tm) // tm < 4:
        tm //= 2

    def est(tm_, tk_):
        # double-buffered adj + support blocks, (double-)buffered f32 out block
        return (2 * tm_ * tk_ * itemsize
                + 2 * tk_ * fp * itemsize
                + 2 * tm_ * fp * 4)

    while est(tm, tk) > vmem_budget and (tm > _LANE or tk > _LANE):
        if tk >= tm and tk > _LANE:
            tk //= 2
        else:
            tm //= 2
    return tm, tk


def _tile_metadata(adj, n, tm, tk, n_i, n_k):
    """Per-row-tile compacted lists of non-empty adj column tiles.

    Returns (cols_flat int32[n_i*n_j], counts int32[n_i], n_j). Falls back to
    the dense (all tiles listed) schedule when adj is a tracer (under jit)."""
    try:
        a = np.asarray(adj)          # pulls to host; fails under tracing
    except Exception:
        a = None
    if a is None:
        counts = np.full((n_i,), n_k, np.int32)
        cols = np.tile(np.arange(n_k, dtype=np.int32), (n_i, 1))
        return cols.reshape(-1), counts, n_k

    mask = np.zeros((n_i, n_k), dtype=bool)
    for i in range(n_i):
        blk = a[i * tm:min((i + 1) * tm, n)]
        nz = (blk != 0).any(axis=0) if blk.size else np.zeros((n,), bool)
        nz = np.pad(nz, (0, n_k * tk - n))
        mask[i] = nz.reshape(n_k, tk).any(axis=1)

    counts = mask.sum(axis=1).astype(np.int32)
    n_j = max(int(counts.max()), 1)
    cols = np.zeros((n_i, n_j), dtype=np.int32)
    for i in range(n_i):
        idx = np.nonzero(mask[i])[0].astype(np.int32)
        cols[i, :idx.size] = idx
    return cols.reshape(-1), counts, n_j


# ---------------------------------------------------------------------------
# Phase 1: support = x @ W, tiled over node rows.
# ---------------------------------------------------------------------------
def _support_kernel(x_ref, w_ref, out_ref):
    out_ref[...] = jnp.dot(
        x_ref[...], w_ref[...], preferred_element_type=jnp.float32
    ).astype(out_ref.dtype)


# ---------------------------------------------------------------------------
# Phase 2: out = adj @ support + bias, grid = (row tile i, compacted col tile j).
# Accumulates directly into the resident f32 output block; empty tiles skipped.
# ---------------------------------------------------------------------------
def _aggregate_kernel(cols_ref, counts_ref, adj_ref, sup_ref, b_ref, out_ref):
    i = pl.program_id(0)
    j = pl.program_id(1)

    @pl.when(j == 0)
    def _():
        out_ref[...] = jnp.broadcast_to(b_ref[...], out_ref.shape)

    @pl.when(j < counts_ref[i])
    def _():
        out_ref[...] += jnp.dot(
            adj_ref[...], sup_ref[...], preferred_element_type=jnp.float32)


def gcn_layer_forward(x, adj, weight, bias, *, compute_dtype=jnp.bfloat16):
    """Pallas implementation of GCNLayer.forward. Returns (out, adj).

    compute_dtype: MXU input / HBM-stream dtype (bf16 default; f32 supported).
    Accumulation, bias add, and the output are always f32."""
    N, Fin = x.shape
    Fout = weight.shape[1]
    if bias is None:
        bias = jnp.zeros((1, Fout), jnp.float32)
    cd = jnp.dtype(compute_dtype)

    # Lane-dense minor dim (kept at a 128 multiple; do NOT inflate to 256).
    Fp = _round_up(Fout, _LANE)

    vmem_limit = _vmem_limit_bytes()
    tm, tk = _select_tiles(N, Fp, cd.itemsize, vmem_budget=vmem_limit // 2)

    Npr = _round_up(N, tm)      # padded rows   (adj rows / out rows)
    Npc = _round_up(N, tk)      # padded cols   (adj cols / support rows)
    n_i, n_k = Npr // tm, Npc // tk

    # Fused zero-pad + cast: one HBM write per array (zero pad is exact).
    x_c = jnp.zeros((Npc, Fin), cd).at[:N, :].set(x.astype(cd))
    adj_c = jnp.zeros((Npr, Npc), cd).at[:N, :N].set(adj.astype(cd))
    w_c = jnp.zeros((Fin, Fp), cd).at[:, :Fout].set(weight.astype(cd))
    b_p = jnp.zeros((1, Fp), jnp.float32).at[:, :Fout].set(
        bias.astype(jnp.float32))

    # Block-sparse schedule (dense fallback under jit).
    cols_np, counts_np, n_j = _tile_metadata(adj, N, tm, tk, n_i, n_k)
    cols = jnp.asarray(cols_np, jnp.int32)
    counts = jnp.asarray(counts_np, jnp.int32)
    nnz_tiles = int(counts_np.sum())

    # ---- phase 1: support = x @ W (computed once) ----------------------------
    t1 = min(tk, 512)
    support = pl.pallas_call(
        _support_kernel,
        out_shape=jax.ShapeDtypeStruct((Npc, Fp), cd),
        grid_spec=pltpu.PrefetchScalarGridSpec(
            num_scalar_prefetch=0,
            grid=(Npc // t1,),
            in_specs=[
                pl.BlockSpec((t1, Fin), lambda i: (i, 0)),
                pl.BlockSpec((Fin, Fp), lambda i: (0, 0)),
            ],
            out_specs=pl.BlockSpec((t1, Fp), lambda i: (i, 0)),
        ),
        compiler_params=pltpu.CompilerParams(
            dimension_semantics=("parallel",),
            vmem_limit_bytes=vmem_limit,
        ),
    )(x_c, w_c)

    # ---- phase 2: out = adj @ support + bias ---------------------------------
    def adj_map(i, j, cols_ref, counts_ref):
        jj = jnp.maximum(jnp.minimum(j, counts_ref[i] - 1), 0)
        return (i, cols_ref[i * n_j + jj])

    def sup_map(i, j, cols_ref, counts_ref):
        jj = jnp.maximum(jnp.minimum(j, counts_ref[i] - 1), 0)
        return (cols_ref[i * n_j + jj], 0)

    def bias_map(i, j, cols_ref, counts_ref):
        return (0, 0)

    def out_map(i, j, cols_ref, counts_ref):
        return (i, 0)

    cost = pl.CostEstimate(
        flops=2 * nnz_tiles * tm * tk * Fp,
        transcendentals=0,
        bytes_accessed=(nnz_tiles * (tm * tk + tk * Fp) * cd.itemsize
                        + Npr * Fp * 4),
    )

    out_p = pl.pallas_call(
        _aggregate_kernel,
        out_shape=jax.ShapeDtypeStruct((Npr, Fp), jnp.float32),
        grid_spec=pltpu.PrefetchScalarGridSpec(
            num_scalar_prefetch=2,
            grid=(n_i, n_j),
            in_specs=[
                pl.BlockSpec((tm, tk), adj_map),    # adj tile (skipped if empty)
                pl.BlockSpec((tk, Fp), sup_map),    # matching support slab
                pl.BlockSpec((1, Fp), bias_map),    # bias
            ],
            out_specs=pl.BlockSpec((tm, Fp), out_map),
        ),
        compiler_params=pltpu.CompilerParams(
            dimension_semantics=("parallel", "arbitrary"),
            vmem_limit_bytes=vmem_limit,
        ),
        cost_estimate=cost,
    )(cols, counts, adj_c, support, b_p)

    out = out_p[:N, :Fout]
    return out, adj


def init_params(key, in_features, out_features, gain=0.02):
    """Xavier-normal weight and zero bias, matching the module defaults."""
    std = gain * math.sqrt(2.0 / (in_features + out_features))
    weight = std * jax.random.normal(key, (in_features, out_features),
                                     jnp.float32)
    bias = jnp.zeros((1, out_features), jnp.float32)
    return weight, bias


if __name__ == "__main__":
    key = jax.random.PRNGKey(0)
    k_x, k_adj, k_w, k_x2, k_adj2 = jax.random.split(key, 5)

    def reference(xx, aa, w, b):
        sup = jnp.dot(xx, w, precision=jax.lax.Precision.HIGHEST)
        return jnp.dot(aa, sup, precision=jax.lax.Precision.HIGHEST) + b

    def dense_graph(kx, ka, n, fin):
        xx = jax.random.normal(kx, (n, fin), jnp.float32)
        a = (jax.random.uniform(ka, (n, n)) < 0.1).astype(jnp.float32)
        aa = a + a.T + jnp.eye(n, dtype=jnp.float32)
        aa = aa / jnp.maximum(aa.sum(axis=1, keepdims=True), 1.0)
        return xx, aa

    def banded_graph(kx, n, fin, halfwidth=20):
        xx = jax.random.normal(kx, (n, fin), jnp.float32)
        idx = jnp.arange(n)
        aa = (jnp.abs(idx[:, None] - idx[None, :]) <= halfwidth)
        aa = aa.astype(jnp.float32)
        aa = aa / aa.sum(axis=1, keepdims=True)
        return xx, aa

    # --- small smoke test (single tile), f32 path -----------------------------
    N, Fin, Fout = 64, 32, 16
    x, adj = dense_graph(k_x, k_adj, N, Fin)
    weight, bias = init_params(k_w, Fin, Fout, gain=1.0)
    out, adj_out = gcn_layer_forward(x, adj, weight, bias,
                                     compute_dtype=jnp.float32)
    jax.block_until_ready(out)
    ref = reference(x, adj, weight, bias)
    assert out.shape == (N, Fout)
    assert jnp.allclose(out, ref, atol=1e-4, rtol=1e-4)
    assert adj_out is adj

    # --- multi-tile banded graph (exercises block-sparse skipping) ------------
    N2, Fin2, Fout2 = 1100, 96, 16
    x2, adj2 = banded_graph(k_x2, N2, Fin2)
    w2, b2 = init_params(k_w, Fin2, Fout2, gain=1.0)
    ref2 = reference(x2, adj2, w2, b2)

    out_f32, _ = gcn_layer_forward(x2, adj2, w2, b2, compute_dtype=jnp.float32)
    jax.block_until_ready(out_f32)
    assert jnp.allclose(out_f32, ref2, atol=1e-3, rtol=1e-3)

    out_bf16, _ = gcn_layer_forward(x2, adj2, w2, b2)   # bf16 default fast path
    jax.block_until_ready(out_bf16)
    assert jnp.allclose(out_bf16, ref2, atol=2e-2, rtol=2e-2)

    # --- dense-ish random graph, bf16 default path ----------------------------
    N3, Fin3, Fout3 = 300, 48, 32
    x3, adj3 = dense_graph(k_x2, k_adj2, N3, Fin3)
    w3, b3 = init_params(k_w, Fin3, Fout3, gain=1.0)
    out3, _ = gcn_layer_forward(x3, adj3, w3, b3)
    jax.block_until_ready(out3)
    ref3 = reference(x3, adj3, w3, b3)
    assert jnp.allclose(out3, ref3, atol=2e-2, rtol=2e-2)

    print("KERNEL_OK")
</pallas_src>

<mosaic_0001>
module attributes {stable_mosaic.version = 11 : i64} {
  func.func @_support_kernel(%arg0: i32, %arg1: memref<128x32xf32, #tpu.memory_space<vmem>>, %arg2: memref<32x128xf32, #tpu.memory_space<vmem>>, %arg3: memref<128x128xf32, #tpu.memory_space<vmem>>) attributes {dimension_semantics = [#tpu.dimension_semantics<parallel>], iteration_bounds = array<i64: 1>, scalar_prefetch = 0 : i64, scratch_operands = 0 : i64, tpu.core_type = #tpu.core_type<tc>, window_params = [{transform_indices = @transform_0, window_bounds = array<i64: 128, 32>}, {pipeline_mode = #tpu.pipeline_mode<synchronous>, transform_indices = @transform_1, window_bounds = array<i64: 32, 128>}, {transform_indices = @transform_2, window_bounds = array<i64: 128, 128>}]} {
    %c0 = arith.constant 0 : index
    %c0_0 = arith.constant 0 : index
    %0 = vector.load %arg1[%c0, %c0_0] : memref<128x32xf32, #tpu.memory_space<vmem>>, vector<128x32xf32>
    %c0_1 = arith.constant 0 : index
    %c0_2 = arith.constant 0 : index
    %1 = vector.load %arg2[%c0_1, %c0_2] : memref<32x128xf32, #tpu.memory_space<vmem>>, vector<32x128xf32>
    %cst = arith.constant dense<0.000000e+00> : vector<128x128xf32>
    %2 = tpu.matmul %0, %1, %cst {dimension_numbers = #tpu.dot_dimension_numbers<[1], [0], [0], [1], [0, 0, 1, 1], [], []>} : vector<128x32xf32>, vector<32x128xf32>, vector<128x128xf32> -> vector<128x128xf32>
    %c0_3 = arith.constant 0 : index
    %c0_4 = arith.constant 0 : index
    %3 = vector.load %arg3[%c0_3, %c0_4] : memref<128x128xf32, #tpu.memory_space<vmem>>, vector<128x128xf32>
    tpu.vector_store %arg3[%c0_3, %c0_4], %2 {strides = array<i32>} : memref<128x128xf32, #tpu.memory_space<vmem>>, vector<128x128xf32>,
    return
  }
  func.func @transform_0(%arg0: i32) -> (i32, i32) {
    %c0_i32 = arith.constant 0 : i32
    %c0_i32_0 = arith.constant 0 : i32
    return %arg0, %c0_i32 : i32, i32
  }
  func.func @transform_1(%arg0: i32) -> (i32, i32) {
    %c0_i32 = arith.constant 0 : i32
    %c0_i32_0 = arith.constant 0 : i32
    %c0_i32_1 = arith.constant 0 : i32
    return %c0_i32, %c0_i32_0 : i32, i32
  }
  func.func @transform_2(%arg0: i32) -> (i32, i32) {
    %c0_i32 = arith.constant 0 : i32
    %c0_i32_0 = arith.constant 0 : i32
    return %arg0, %c0_i32 : i32, i32
  }
}

</mosaic_0001>

<bundles_post_ra>
// kernel: tpu_custom_call.1
= control target key start
LH: loop header
LB: loop body
LE: loop exit
PB: predicated region body
PF: predicated region fallthrough
CT: control target
= control target key end

     0   :  { %vm32_vm0 = vcmask 261120   ;;  %s334_s0 = inlined_call_operand.vmem [shape: f32[128,32], index: 0, kind: input, shape index: {}]   ;;  %s335_s1 = inlined_call_operand.vmem [shape: f32[32,128], index: 1, kind: input, shape index: {}]   ;;  %s336_s2 = inlined_call_operand.hbm [shape: f32[128,128], index: 2, kind: output, shape index: {}]  }
   0x1   :  { %v31_v0 = vld [vmem:[%s335_s1 + $0x18] sm:$0xff]  ;;  %v30_v1 = vld [vmem:[%s335_s1 + $0x10] sm:$0xff]  ;;  %v29_v2 = vld [vmem:[%s335_s1 + $0x8] sm:$0xff] }
   0x2   :  { %197 = vmatpush.msra.mxu2 %v31_v0  ;;  %198 = vmatpush.msra.mxu3 %v31_v0  ;;  %v28_v3 = vld [vmem:[%s335_s1] sm:$0xff] }
   0x3   :  { %93 = vmatpush.msra.mxu0 %v31_v0  ;;  %196 = vmatpush.msra.mxu1 %v31_v0  ;;  %v20_v4 = vld [vmem:[%s334_s0 + $0x40] sm:$0xff] }
   0x4   :  { %200 = vmatpush.msra.mxu2 %v30_v1  ;;  %201 = vmatpush.msra.mxu3 %v30_v1  ;;  %v24_v5 = vld [vmem:[%s334_s0 + $0x60] sm:$0xff] }
   0x5   :  { %94 = vmatpush.msra.mxu0 %v30_v1  ;;  %199 = vmatpush.msra.mxu1 %v30_v1 }
   0x6   :  { %203 = vmatpush.msra.mxu2 %v29_v2  ;;  %204 = vmatpush.msra.mxu3 %v29_v2 }
   0x7   :  { %95 = vmatpush.msra.mxu0 %v29_v2  ;;  %202 = vmatpush.msra.mxu1 %v29_v2 }
   0x8   :  { %7 = vsyncpa [#allocation3], 0  ;;  %206 = vmatpush.msra.mxu2 %v28_v3  ;;  %207 = vmatpush.msra.mxu3 %v28_v3  ;;  %v12_v6 = vld [vmem:[%s334_s0] sm:$0xff]  ;;  %v21_v8 = vld [vmem:[%s334_s0 + $0x48] sm:$0xff]  ;;  %s168_s22 = sshll.u32 %s336_s2, 4  ;;  %s238_s23 = smov 128   ;;  %s169_s22 = int_to_ptr.hbm [resolvable:$true] %s168_s22 }
   0x9   :  { %v16_v7 = vld [vmem:[%s334_s0 + $0x20] sm:$0xff]  ;;  %188 = vmatmul.msk.f32.vlgmr.msra.gmra.mxu2 %vm32_vm0, %v20_v4  ;;  %192 = vmatmul.msk.f32.vlgmr.msra.gmra.mxu3 %vm32_vm0, %v24_v5  ;;  %v25_v9 = vld [vmem:[%s334_s0 + $0x68] sm:$0xff]  ;;  %v22_v12 = vld [vmem:[%s334_s0 + $0x50] sm:$0xff]  ;;  %s239_s24 = smov 8  }
   0xa   :  { %96 = vmatpush.msra.mxu0 %v28_v3  ;;  %205 = vmatpush.msra.mxu1 %v28_v3  ;;  %v13_v10 = vld [vmem:[%s334_s0 + $0x8] sm:$0xff]  ;;  %v26_v13 = vld [vmem:[%s334_s0 + $0x70] sm:$0xff]  ;;  %v23_v16 = vld [vmem:[%s334_s0 + $0x58] sm:$0xff] }
   0xb   :  { %180 = vmatmul.msk.f32.vlgmr.msra.gmra.mxu0 %vm32_vm0, %v12_v6  ;;  %184 = vmatmul.msk.f32.vlgmr.msra.gmra.mxu1 %vm32_vm0, %v16_v7  ;;  %v17_v11 = vld [vmem:[%s334_s0 + $0x28] sm:$0xff]  ;;  %v14_v14 = vld [vmem:[%s334_s0 + $0x10] sm:$0xff]  ;;  %v27_v17 = vld [vmem:[%s334_s0 + $0x78] sm:$0xff] }
   0xc   :  { %v18_v15 = vld [vmem:[%s334_s0 + $0x30] sm:$0xff]  ;;  %v15_v18 = vld [vmem:[%s334_s0 + $0x18] sm:$0xff] }
   0xd   :  { %v19_v19 = vld [vmem:[%s334_s0 + $0x38] sm:$0xff]  ;;  %s237_s0 = smov [#allocation2]  }
   0xe   :  { %s166_s20 = sshll.u32 %s237_s0, 4  ;;  %s167_s20 = int_to_ptr.vmem [resolvable:$true] %s166_s20 }
  0x11   :  { %189 = vmatmul.msk.f32.gmra.mxu2 %vm32_vm0, %v21_v8  ;;  %193 = vmatmul.msk.f32.gmra.mxu3 %vm32_vm0, %v25_v9 }
  0x13   :  { %181 = vmatmul.msk.f32.gmra.mxu0 %vm32_vm0, %v13_v10  ;;  %185 = vmatmul.msk.f32.gmra.mxu1 %vm32_vm0, %v17_v11 }
  0x19   :  { %190 = vmatmul.msk.f32.gmra.mxu2 %vm32_vm0, %v22_v12  ;;  %194 = vmatmul.msk.f32.gmra.mxu3 %vm32_vm0, %v26_v13 }
  0x1b   :  { %182 = vmatmul.msk.f32.gmra.mxu0 %vm32_vm0, %v14_v14  ;;  %186 = vmatmul.msk.f32.gmra.mxu1 %vm32_vm0, %v18_v15 }
  0x21   :  { %191 = vmatmul.msk.f32.gmra.mxu2 %vm32_vm0, %v23_v16  ;;  %195 = vmatmul.msk.f32.gmra.mxu3 %vm32_vm0, %v27_v17 }
  0x23   :  { %183 = vmatmul.msk.f32.gmra.mxu0 %vm32_vm0, %v15_v18  ;;  %187 = vmatmul.msk.f32.gmra.mxu1 %vm32_vm0, %v19_v19 }
  0x88   :  { %v98_v20 = vpop.f32.mrf.mxu0  ;;  %v110_v21 = vpop.f32.mrf.mxu1 }
  0x89   :  { %146 = vst [vmem:[#allocation2] sm:$0xff] %v98_v20 }
  0x8a   :  { %150 = vst [vmem:[#allocation2 + $0x20] sm:$0xff] %v110_v21 }
  0x8c   :  { %v122_v22 = vpop.f32.mrf.mxu2  ;;  %v134_v23 = vpop.f32.mrf.mxu3 }
  0x8d   :  { %154 = vst [vmem:[#allocation2 + $0x40] sm:$0xff] %v122_v22 }
  0x8e   :  { %158 = vst [vmem:[#allocation2 + $0x60] sm:$0xff] %v134_v23 }
  0x90   :  { %v101_v24 = vpop.f32.mrf.mxu0  ;;  %v113_v25 = vpop.f32.mrf.mxu1 }
  0x91   :  { %147 = vst [vmem:[#allocation2 + $0x8] sm:$0xff] %v101_v24 }
  0x92   :  { %151 = vst [vmem:[#allocation2 + $0x28] sm:$0xff] %v113_v25 }
  0x94   :  { %v125_v26 = vpop.f32.mrf.mxu2  ;;  %v137_v27 = vpop.f32.mrf.mxu3 }
  0x95   :  { %155 = vst [vmem:[#allocation2 + $0x48] sm:$0xff] %v125_v26 }
  0x96   :  { %159 = vst [vmem:[#allocation2 + $0x68] sm:$0xff] %v137_v27 }
  0x98   :  { %v104_v28 = vpop.f32.mrf.mxu0  ;;  %v116_v29 = vpop.f32.mrf.mxu1 }
  0x99   :  { %148 = vst [vmem:[#allocation2 + $0x10] sm:$0xff] %v104_v28 }
  0x9a   :  { %152 = vst [vmem:[#allocation2 + $0x30] sm:$0xff] %v116_v29 }
  0x9c   :  { %v128_v30 = vpop.f32.mrf.mxu2  ;;  %v140_v31 = vpop.f32.mrf.mxu3 }
  0x9d   :  { %156 = vst [vmem:[#allocation2 + $0x50] sm:$0xff] %v128_v30 }
  0x9e   :  { %160 = vst [vmem:[#allocation2 + $0x70] sm:$0xff] %v140_v31 }
  0xa0   :  { %v107_v32 = vpop.f32.mrf.mxu0  ;;  %v119_v33 = vpop.f32.mrf.mxu1 }
  0xa1   :  { %149 = vst [vmem:[#allocation2 + $0x18] sm:$0xff] %v107_v32 }
  0xa2   :  { %153 = vst [vmem:[#allocation2 + $0x38] sm:$0xff] %v119_v33 }
  0xa4   :  { %v131_v34 = vpop.f32.mrf.mxu2  ;;  %v143_v35 = vpop.f32.mrf.mxu3 }
  0xa5   :  { %157 = vst [vmem:[#allocation2 + $0x58] sm:$0xff] %v131_v34 }
  0xa6   :  { %161 = vst [vmem:[#allocation2 + $0x78] sm:$0xff] %v143_v35 }
  0xa7   :  { %174 = dma.vmem_to_hbm [thread:$0]  %s167_s20, 2048, %s169_s22, [#allocation3], %s238_s23, %s238_s23, %s239_s24  }
  0xa8   :  { %235 = dma.done.wait [#allocation3], 2048  }
  0xa9   :  { %236 = vsyncadd [#allocation3], 4294965248 }
  0xaa   :  { %179 = vsyncpa [#allocation3], 1 }

</bundles_post_ra>
